<compile_context>
chip_gen: v7x
topology: tpu7x:2x2x1
jax: 0.10.0
libtpu: 0.0.40
codegen_flags: <defaults>
</compile_context>

<pallas_src>
import jax
import jax.numpy as jnp
from jax.experimental import pallas as pl
from jax.experimental.pallas import tpu as pltpu

KH, KW = 3, 3   # 3x3 conv, padding=1 (same)


def _round_up(x, m):
    return ((x + m - 1) // m) * m


def _matmul_bias_relu_kernel(x_ref, w_ref, b_ref, o_ref):
    """One fused tap-matmul + bias + ReLU.

    x_ref: (M_TILE, K_pad) bf16  im2col rows (K_pad = 40, zero-padded cols)
    w_ref: (K_pad, Cout)   bf16  flattened conv weights (zero-padded rows)
    b_ref: (1, Cout)       f32   bias
    o_ref: (M_TILE, Cout)  f32   compact output (no lane padding)
    """
    acc = jnp.dot(x_ref[...], w_ref[...], preferred_element_type=jnp.float32)
    o_ref[...] = jnp.maximum(acc + b_ref[...], 0.0).astype(o_ref.dtype)


@jax.jit
def conv_relu_pallas(x_nchw, w, b):
    """Inner synthetic model: Conv2d(Cin->Cout, 3x3, stride=1, pad=1) + ReLU.

    x_nchw: (B, Cin, H, W) float32   (PyTorch NCHW interface preserved)
    w:      (KH, KW, Cin, Cout) float32
    b:      (Cout,) float32
    returns (B, Cout, H, W) float32
    """
    B, Cin, H, W = x_nchw.shape
    Cout = w.shape[-1]
    M = B * H * W
    K_raw = KH * KW * Cin
    K_pad = _round_up(K_raw, 8)         # sublane-friendly; NOT padded to 128

    # --- im2col in the wrapper (NCHW->NHWC folded into tap extraction) ------
    x_nhwc = jnp.transpose(x_nchw, (0, 2, 3, 1)).astype(jnp.bfloat16)
    x_p = jnp.pad(x_nhwc, ((0, 0), (1, 1), (1, 1), (0, 0)))
    taps = [x_p[:, dy:dy + H, dx:dx + W, :]
            for dy in range(KH) for dx in range(KW)]          # (dy,dx)-major
    patches = jnp.concatenate(taps, axis=-1).reshape(M, K_raw)

    # --- M tiling ------------------------------------------------------------
    if M <= 512:
        M_TILE = _round_up(M, 16)       # single pipeline step for toy sizes
    elif M <= 8192:
        M_TILE = 512                    # >=2 tiles -> both v7x cores active
    else:
        M_TILE = 2048                   # amortize per-step overhead
    M_pad = _round_up(M, M_TILE)
    grid_m = M_pad // M_TILE

    x_mat = jnp.pad(patches, ((0, M_pad - M), (0, K_pad - K_raw)))
    w_mat = jnp.pad(w.reshape(K_raw, Cout).astype(jnp.bfloat16),
                    ((0, K_pad - K_raw), (0, 0)))
    b_mat = b.reshape(1, Cout).astype(jnp.float32)

    out = pl.pallas_call(
        _matmul_bias_relu_kernel,
        out_shape=jax.ShapeDtypeStruct((M_pad, Cout), jnp.float32),
        grid_spec=pltpu.PrefetchScalarGridSpec(
            num_scalar_prefetch=0,
            grid=(grid_m,),
            in_specs=[
                pl.BlockSpec((M_TILE, K_pad), lambda i: (i, 0)),
                pl.BlockSpec((K_pad, Cout), lambda i: (0, 0)),   # resident
                pl.BlockSpec((1, Cout), lambda i: (0, 0)),       # resident
            ],
            out_specs=pl.BlockSpec((M_TILE, Cout), lambda i: (i, 0)),
        ),
        compiler_params=pltpu.CompilerParams(
            dimension_semantics=("parallel",)),
    )(x_mat, w_mat, b_mat)

    # back to the PyTorch NCHW interface (no N slicing needed: output compact)
    out = out[:M].reshape(B, H, W, Cout)
    return jnp.transpose(out, (0, 3, 1, 2))


class InnerModel:
    """Synthetic stand-in for the wrapped `model` (Conv2d 4->8, 3x3 + ReLU)."""

    def __init__(self, cin=4, cout=8, key=jax.random.PRNGKey(42)):
        kw, kb = jax.random.split(key)
        fan_in = cin * KH * KW
        scale = 1.0 / jnp.sqrt(jnp.float32(fan_in))
        self.w = jax.random.uniform(kw, (KH, KW, cin, cout),
                                    minval=-scale, maxval=scale,
                                    dtype=jnp.float32)
        self.b = jax.random.uniform(kb, (cout,), minval=-scale, maxval=scale,
                                    dtype=jnp.float32)

    def __call__(self, x):
        return conv_relu_pallas(x, self.w, self.b)


class DummyModule:
    """Faithful port of nnet/py_factory.py::DummyModule — pure delegation."""

    def __init__(self, model):
        self.module = model

    def __call__(self, *xs, **kwargs):
        return self.module(*xs, **kwargs)

    # mirror nn.Module.forward
    forward = __call__


if __name__ == "__main__":
    key = jax.random.PRNGKey(0)
    B, Cin, H, W = 2, 4, 16, 16
    x = jax.random.normal(key, (B, Cin, H, W), dtype=jnp.float32)

    model = DummyModule(InnerModel(cin=Cin, cout=8))
    out = model(x)
    out = jax.block_until_ready(out)

    # sanity: compare against pure-JAX f32 reference of the inner model
    # (bf16 LHS/RHS in the kernel -> loosened tolerance)
    w, b = model.module.w, model.module.b
    x_nhwc = jnp.transpose(x, (0, 2, 3, 1))
    ref = jax.lax.conv_general_dilated(
        x_nhwc, w, window_strides=(1, 1), padding="SAME",
        dimension_numbers=("NHWC", "HWIO", "NHWC"))
    ref = jnp.maximum(ref + b, 0.0)
    ref = jnp.transpose(ref, (0, 3, 1, 2))
    assert out.shape == (B, 8, H, W)
    err = float(jnp.max(jnp.abs(out - ref)))
    assert jnp.allclose(out, ref, atol=3e-2, rtol=3e-2), f"max abs err {err}"

    print("KERNEL_OK")
</pallas_src>

<mosaic_0001>
module attributes {stable_mosaic.version = 11 : i64} {
  func.func @_matmul_bias_relu_kernel(%arg0: i32, %arg1: memref<512x40xbf16, #tpu.memory_space<vmem>>, %arg2: memref<40x8xbf16, #tpu.memory_space<vmem>>, %arg3: memref<1x8xf32, #tpu.memory_space<vmem>>, %arg4: memref<512x8xf32, #tpu.memory_space<vmem>>) attributes {dimension_semantics = [#tpu.dimension_semantics<parallel>], iteration_bounds = array<i64: 1>, scalar_prefetch = 0 : i64, scratch_operands = 0 : i64, tpu.core_type = #tpu.core_type<tc>, window_params = [{transform_indices = @transform_0, window_bounds = array<i64: 512, 40>}, {pipeline_mode = #tpu.pipeline_mode<synchronous>, transform_indices = @transform_1, window_bounds = array<i64: 40, 8>}, {pipeline_mode = #tpu.pipeline_mode<synchronous>, transform_indices = @transform_2, window_bounds = array<i64: 1, 8>}, {transform_indices = @transform_3, window_bounds = array<i64: 512, 8>}]} {
    %c0 = arith.constant 0 : index
    %c0_0 = arith.constant 0 : index
    %0 = vector.load %arg1[%c0, %c0_0] : memref<512x40xbf16, #tpu.memory_space<vmem>>, vector<512x40xbf16>
    %c0_1 = arith.constant 0 : index
    %c0_2 = arith.constant 0 : index
    %1 = vector.load %arg2[%c0_1, %c0_2] : memref<40x8xbf16, #tpu.memory_space<vmem>>, vector<40x8xbf16>
    %cst = arith.constant dense<0.000000e+00> : vector<512x8xf32>
    %2 = tpu.matmul %0, %1, %cst {dimension_numbers = #tpu.dot_dimension_numbers<[1], [0], [0], [1], [0, 0, 1, 1], [], []>} : vector<512x40xbf16>, vector<40x8xbf16>, vector<512x8xf32> -> vector<512x8xf32>
    %c0_3 = arith.constant 0 : index
    %c0_4 = arith.constant 0 : index
    %3 = vector.load %arg3[%c0_3, %c0_4] : memref<1x8xf32, #tpu.memory_space<vmem>>, vector<1x8xf32>
    %4 = vector.broadcast %3 : vector<1x8xf32> to vector<512x8xf32>
    %5 = arith.addf %2, %4 : vector<512x8xf32>
    %cst_5 = arith.constant 0.000000e+00 : f32
    %6 = vector.broadcast %cst_5 : f32 to vector<512x8xf32>
    %7 = arith.maximumf %5, %6 : vector<512x8xf32>
    %c0_6 = arith.constant 0 : index
    %c0_7 = arith.constant 0 : index
    %8 = vector.load %arg4[%c0_6, %c0_7] : memref<512x8xf32, #tpu.memory_space<vmem>>, vector<512x8xf32>
    tpu.vector_store %arg4[%c0_6, %c0_7], %7 {strides = array<i32>} : memref<512x8xf32, #tpu.memory_space<vmem>>, vector<512x8xf32>,
    return
  }
  func.func @transform_0(%arg0: i32) -> (i32, i32) {
    %c0_i32 = arith.constant 0 : i32
    %c0_i32_0 = arith.constant 0 : i32
    return %arg0, %c0_i32 : i32, i32
  }
  func.func @transform_1(%arg0: i32) -> (i32, i32) {
    %c0_i32 = arith.constant 0 : i32
    %c0_i32_0 = arith.constant 0 : i32
    %c0_i32_1 = arith.constant 0 : i32
    return %c0_i32, %c0_i32_0 : i32, i32
  }
  func.func @transform_2(%arg0: i32) -> (i32, i32) {
    %c0_i32 = arith.constant 0 : i32
    %c0_i32_0 = arith.constant 0 : i32
    %c0_i32_1 = arith.constant 0 : i32
    return %c0_i32, %c0_i32_0 : i32, i32
  }
  func.func @transform_3(%arg0: i32) -> (i32, i32) {
    %c0_i32 = arith.constant 0 : i32
    %c0_i32_0 = arith.constant 0 : i32
    return %arg0, %c0_i32 : i32, i32
  }
}

</mosaic_0001>

<bundles_post_ra>
// kernel: conv_relu_pallas.1
= control target key start
LH: loop header
LB: loop body
LE: loop exit
PB: predicated region body
PF: predicated region fallthrough
CT: control target
= control target key end

     0   :  { %vm266_vm0 = vcmask 326656   ;;  %vm363_vm1 = vcmask 1043456   ;;  %vm720_vm2 = vcmask 64512   ;;  %s1487_s1 = inlined_call_operand.vmem [shape: bf16[40,8], index: 1, kind: input, shape index: {}]   ;;  %s1488_s0 = inlined_call_operand.vmem [shape: bf16[512,40], index: 0, kind: input, shape index: {}]   ;;  %s1489_s2 = inlined_call_operand.vmem [shape: f32[1,8], index: 2, kind: input, shape index: {}]   ;;  %s1490_s3 = inlined_call_operand.vmem [shape: f32[512,8], index: 3, kind: output, shape index: {}]  }
   0x1   :  { %v970_v0 = vld [vmem:[%s1487_s1] sm:$0xff]   ;;  %v971_v1 = vld [vmem:[%s1487_s1 + $0x8] sm:$0xff]   ;;  %v972_v2 = vld [vmem:[%s1487_s1 + $0x10] ss:$0 sps:$4 sm:$0xff]  }
   0x2   :  { %892 = vmatprep.subr.bf16.mxu0 %v970_v0  ;;  %962 = vmatprep.subr.bf16.mxu1 %v970_v0  ;;  %v973_v3 = vld [vmem:[%s1488_s0] sm:$0xff]   ;;  %v365_v5 = vsel %vm363_vm1, %v972_v2, 0  ;;  %v975_v6 = vld [vmem:[%s1488_s0 + $0x8] sm:$0xff]   ;;  %v977_v8 = vld [vmem:[%s1488_s0 + $0x10] sm:$0xff]  }
   0x3   :  { %893 = vmatpush3.bf16.msra.mxu0 %v970_v0  ;;  %965 = vmatpush3.bf16.msra.mxu1 %v970_v0  ;;  %v974_v4 = vld [vmem:[%s1488_s0 + $0x80] sm:$0xff]   ;;  %v976_v7 = vld [vmem:[%s1488_s0 + $0x88] sm:$0xff]   ;;  %v978_v9 = vld [vmem:[%s1488_s0 + $0x90] sm:$0xff]  }
   0x4   :  { %894 = vmatprep.subr.bf16.mxu0 %v971_v1  ;;  %963 = vmatprep.subr.bf16.mxu1 %v971_v1  ;;  %v979_v10 = vld [vmem:[%s1488_s0 + $0x18] sm:$0xff]   ;;  %v981_v12 = vld [vmem:[%s1488_s0 + $0x20] sm:$0xff]   ;;  %v983_v14 = vld [vmem:[%s1488_s0 + $0x28] sm:$0xff]  }
   0x5   :  { %898 = vmatprep.mubr.msk.bf16.mxu0 %vm266_vm0, %v973_v3  ;;  %930 = vmatprep.mubr.msk.bf16.mxu1 %vm266_vm0, %v974_v4  ;;  %v980_v11 = vld [vmem:[%s1488_s0 + $0x98] sm:$0xff]   ;;  %v982_v13 = vld [vmem:[%s1488_s0 + $0xa0] sm:$0xff]   ;;  %v984_v15 = vld [vmem:[%s1488_s0 + $0xa8] sm:$0xff]  }
   0x6   :  { %v985_v16 = vld [vmem:[%s1488_s0 + $0x30] sm:$0xff]   ;;  %v987_v18 = vld [vmem:[%s1488_s0 + $0x38] sm:$0xff]   ;;  %v989_v20 = vld [vmem:[%s1488_s0 + $0x40] sm:$0xff]  }
   0x7   :  { %895 = vmatpush3.bf16.msra.mxu0 %v971_v1  ;;  %966 = vmatpush3.bf16.msra.mxu1 %v971_v1  ;;  %v986_v17 = vld [vmem:[%s1488_s0 + $0xb0] sm:$0xff]   ;;  %v988_v19 = vld [vmem:[%s1488_s0 + $0xb8] sm:$0xff]   ;;  %v990_v21 = vld [vmem:[%s1488_s0 + $0xc0] sm:$0xff]  }
   0x8   :  { %968 = vmatprep.subr.msk.bf16.mxu0 %vm363_vm1, %v972_v2  ;;  %969 = vmatprep.subr.msk.bf16.mxu1 %vm363_vm1, %v972_v2  ;;  %v991_v22 = vld [vmem:[%s1488_s0 + $0x48] sm:$0xff]   ;;  %v993_v24 = vld [vmem:[%s1488_s0 + $0x50] sm:$0xff]   ;;  %v995_v26 = vld [vmem:[%s1488_s0 + $0x58] sm:$0xff]  }
   0x9   :  { %v992_v23 = vld [vmem:[%s1488_s0 + $0xc8] sm:$0xff]   ;;  %v994_v25 = vld [vmem:[%s1488_s0 + $0xd0] sm:$0xff]   ;;  %v996_v27 = vld [vmem:[%s1488_s0 + $0xd8] sm:$0xff]  }
   0xa   :  { %v997_v28 = vld [vmem:[%s1488_s0 + $0x60] sm:$0xff]   ;;  %v999_v30 = vld [vmem:[%s1488_s0 + $0x68] sm:$0xff]   ;;  %v1001_v32 = vld [vmem:[%s1488_s0 + $0x70] sm:$0xff]  }
   0xb   :  { %897 = vmatpush3.bf16.msra.mxu0 %v365_v5  ;;  %967 = vmatpush3.bf16.msra.mxu1 %v365_v5  ;;  %v998_v29 = vld [vmem:[%s1488_s0 + $0xe0] sm:$0xff]   ;;  %v1000_v31 = vld [vmem:[%s1488_s0 + $0xe8] sm:$0xff]   ;;  %v1002_v33 = vld [vmem:[%s1488_s0 + $0xf0] sm:$0xff]  }
   0xc   :  { %v1003_v34 = vld [vmem:[%s1488_s0 + $0x78] sm:$0xff]   ;;  %v1165_v36 = vld [vmem:[%s1489_s2] ss:$0 sm:$0xff] }
   0xd   :  { %v1004_v35 = vld [vmem:[%s1488_s0 + $0xf8] sm:$0xff]  }
   0xe   :  { %899 = vmatmul.mubr.msk.bf16.vlgmr.msra.gmra.mrb[0].mxu0 %vm266_vm0, %v975_v6  ;;  %931 = vmatmul.mubr.msk.bf16.vlgmr.msra.gmra.mrb[0].mxu1 %vm266_vm0, %v976_v7 }
   0xf   :  { %902 = vmatprep.mubr.msk.bf16.mxu0 %vm266_vm0, %v977_v8  ;;  %934 = vmatprep.mubr.msk.bf16.mxu1 %vm266_vm0, %v978_v9 }
  0x16   :  { %903 = vmatmul.mubr.msk.bf16.gmra.mrb[4].mxu0 %vm266_vm0, %v979_v10  ;;  %935 = vmatmul.mubr.msk.bf16.gmra.mrb[4].mxu1 %vm266_vm0, %v980_v11 }
  0x17   :  { %906 = vmatprep.mubr.msk.bf16.mxu0 %vm266_vm0, %v981_v12  ;;  %938 = vmatprep.mubr.msk.bf16.mxu1 %vm266_vm0, %v982_v13 }
  0x1e   :  { %907 = vmatmul.mubr.msk.bf16.gmra.mrb[8].mxu0 %vm266_vm0, %v983_v14  ;;  %939 = vmatmul.mubr.msk.bf16.gmra.mrb[8].mxu1 %vm266_vm0, %v984_v15 }
  0x1f   :  { %910 = vmatprep.mubr.msk.bf16.mxu0 %vm266_vm0, %v985_v16  ;;  %942 = vmatprep.mubr.msk.bf16.mxu1 %vm266_vm0, %v986_v17 }
  0x26   :  { %911 = vmatmul.mubr.msk.bf16.gmra.mrb[12].mxu0 %vm266_vm0, %v987_v18  ;;  %943 = vmatmul.mubr.msk.bf16.gmra.mrb[12].mxu1 %vm266_vm0, %v988_v19 }
  0x27   :  { %914 = vmatprep.mubr.msk.bf16.mxu0 %vm266_vm0, %v989_v20  ;;  %946 = vmatprep.mubr.msk.bf16.mxu1 %vm266_vm0, %v990_v21 }
  0x2e   :  { %915 = vmatmul.mubr.msk.bf16.gmra.mrb[16].mxu0 %vm266_vm0, %v991_v22  ;;  %947 = vmatmul.mubr.msk.bf16.gmra.mrb[16].mxu1 %vm266_vm0, %v992_v23 }
  0x2f   :  { %918 = vmatprep.mubr.msk.bf16.mxu0 %vm266_vm0, %v993_v24  ;;  %950 = vmatprep.mubr.msk.bf16.mxu1 %vm266_vm0, %v994_v25 }
  0x36   :  { %919 = vmatmul.mubr.msk.bf16.gmra.mrb[20].mxu0 %vm266_vm0, %v995_v26  ;;  %951 = vmatmul.mubr.msk.bf16.gmra.mrb[20].mxu1 %vm266_vm0, %v996_v27 }
  0x37   :  { %922 = vmatprep.mubr.msk.bf16.mxu0 %vm266_vm0, %v997_v28  ;;  %954 = vmatprep.mubr.msk.bf16.mxu1 %vm266_vm0, %v998_v29 }
  0x3e   :  { %923 = vmatmul.mubr.msk.bf16.gmra.mrb[24].mxu0 %vm266_vm0, %v999_v30  ;;  %955 = vmatmul.mubr.msk.bf16.gmra.mrb[24].mxu1 %vm266_vm0, %v1000_v31 }
  0x3f   :  { %926 = vmatprep.mubr.msk.bf16.mxu0 %vm266_vm0, %v1001_v32  ;;  %958 = vmatprep.mubr.msk.bf16.mxu1 %vm266_vm0, %v1002_v33 }
  0x46   :  { %927 = vmatmul.mubr.msk.bf16.gmra.mrb[28].mxu0 %vm266_vm0, %v1003_v34  ;;  %959 = vmatmul.mubr.msk.bf16.gmra.mrb[28].mxu1 %vm266_vm0, %v1004_v35 }
  0xe1   :  { %v900_v37 = vpop.f32.mrb[0].mxu0  ;;  %v932_v38 = vpop.f32.mrb[0].mxu1 }
  0xe2   :  { %v410_v39 = vadd.f32 %v900_v37, %v1165_v36  ;;  %v538_v40 = vadd.f32 %v932_v38, %v1165_v36  ;;  %v401_v41 = vpop.f32.mrb[1].mxu0  ;;  %v529_v42 = vpop.f32.mrb[1].mxu1 }
  0xe3   :  { %v402_v43 = vadd.f32 %v1165_v36, %v401_v41  ;;  %v530_v44 = vadd.f32 %v1165_v36, %v529_v42  ;;  %v901_v45 = vpop.f32.mrb[2].mxu0  ;;  %v933_v46 = vpop.f32.mrb[2].mxu1 }
  0xe4   :  { %v658_v47 = vmax.f32 %v410_v39, 0.0  ;;  %v690_v48 = vmax.f32 %v538_v40, 0.0  ;;  %v413_v49 = vadd.f32 %v901_v45, %v1165_v36  ;;  %v541_v50 = vadd.f32 %v933_v46, %v1165_v36  ;;  %v404_v51 = vpop.f32.mrb[3].mxu0  ;;  %v532_v52 = vpop.f32.mrb[3].mxu1 }
  0xe5   :  { %v656_v53 = vmax.f32 %v402_v43, 0.0  ;;  %v688_v54 = vmax.f32 %v530_v44, 0.0  ;;  %v405_v55 = vadd.f32 %v1165_v36, %v404_v51  ;;  %v533_v56 = vadd.f32 %v1165_v36, %v532_v52 }
  0xe6   :  { %723 = vst.msk [vmem:[%s1490_s3 + $0x10] sm:$0xff] %vm720_vm2, %v658_v47  ;;  %755 = vst.msk [vmem:[%s1490_s3 + $0x110] sm:$0xff] %vm720_vm2, %v690_v48  ;;  %v659_v57 = vmax.f32 %v413_v49, 0.0  ;;  %v691_v58 = vmax.f32 %v541_v50, 0.0 }
  0xe7   :  { %721 = vst.msk [vmem:[%s1490_s3] sm:$0xff] %vm720_vm2, %v656_v53  ;;  %753 = vst.msk [vmem:[%s1490_s3 + $0x100] sm:$0xff] %vm720_vm2, %v688_v54  ;;  %v657_v59 = vmax.f32 %v405_v55, 0.0  ;;  %v689_v60 = vmax.f32 %v533_v56, 0.0 }
  0xe8   :  { %724 = vst.msk [vmem:[%s1490_s3 + $0x18] sm:$0xff] %vm720_vm2, %v659_v57  ;;  %756 = vst.msk [vmem:[%s1490_s3 + $0x118] sm:$0xff] %vm720_vm2, %v691_v58 }
  0xe9   :  { %722 = vst.msk [vmem:[%s1490_s3 + $0x8] sm:$0xff] %vm720_vm2, %v657_v59  ;;  %754 = vst.msk [vmem:[%s1490_s3 + $0x108] sm:$0xff] %vm720_vm2, %v689_v60  ;;  %v904_v61 = vpop.f32.mrb[4].mxu0  ;;  %v936_v62 = vpop.f32.mrb[4].mxu1 }
  0xea   :  { %v426_v63 = vadd.f32 %v904_v61, %v1165_v36  ;;  %v554_v0 = vadd.f32 %v936_v62, %v1165_v36  ;;  %v417_v1 = vpop.f32.mrb[5].mxu0  ;;  %v545_v2 = vpop.f32.mrb[5].mxu1 }
  0xeb   :  { %v418_v3 = vadd.f32 %v1165_v36, %v417_v1  ;;  %v546_v4 = vadd.f32 %v1165_v36, %v545_v2  ;;  %v905_v5 = vpop.f32.mrb[6].mxu0  ;;  %v937_v6 = vpop.f32.mrb[6].mxu1 }
  0xec   :  { %v662_v7 = vmax.f32 %v426_v63, 0.0  ;;  %v694_v8 = vmax.f32 %v554_v0, 0.0  ;;  %v429_v9 = vadd.f32 %v905_v5, %v1165_v36  ;;  %v557_v10 = vadd.f32 %v937_v6, %v1165_v36  ;;  %v420_v11 = vpop.f32.mrb[7].mxu0  ;;  %v548_v12 = vpop.f32.mrb[7].mxu1 }
  0xed   :  { %v660_v13 = vmax.f32 %v418_v3, 0.0  ;;  %v692_v14 = vmax.f32 %v546_v4, 0.0  ;;  %v421_v15 = vadd.f32 %v1165_v36, %v420_v11  ;;  %v549_v16 = vadd.f32 %v1165_v36, %v548_v12 }
  0xee   :  { %727 = vst.msk [vmem:[%s1490_s3 + $0x30] sm:$0xff] %vm720_vm2, %v662_v7  ;;  %759 = vst.msk [vmem:[%s1490_s3 + $0x130] sm:$0xff] %vm720_vm2, %v694_v8  ;;  %v663_v17 = vmax.f32 %v429_v9, 0.0  ;;  %v695_v18 = vmax.f32 %v557_v10, 0.0 }
  0xef   :  { %725 = vst.msk [vmem:[%s1490_s3 + $0x20] sm:$0xff] %vm720_vm2, %v660_v13  ;;  %757 = vst.msk [vmem:[%s1490_s3 + $0x120] sm:$0xff] %vm720_vm2, %v692_v14  ;;  %v661_v19 = vmax.f32 %v421_v15, 0.0  ;;  %v693_v20 = vmax.f32 %v549_v16, 0.0 }
  0xf0   :  { %728 = vst.msk [vmem:[%s1490_s3 + $0x38] sm:$0xff] %vm720_vm2, %v663_v17  ;;  %760 = vst.msk [vmem:[%s1490_s3 + $0x138] sm:$0xff] %vm720_vm2, %v695_v18 }
  0xf1   :  { %726 = vst.msk [vmem:[%s1490_s3 + $0x28] sm:$0xff] %vm720_vm2, %v661_v19  ;;  %758 = vst.msk [vmem:[%s1490_s3 + $0x128] sm:$0xff] %vm720_vm2, %v693_v20  ;;  %v908_v21 = vpop.f32.mrb[8].mxu0  ;;  %v940_v22 = vpop.f32.mrb[8].mxu1 }
  0xf2   :  { %v442_v23 = vadd.f32 %v908_v21, %v1165_v36  ;;  %v570_v24 = vadd.f32 %v940_v22, %v1165_v36  ;;  %v433_v25 = vpop.f32.mrb[9].mxu0  ;;  %v561_v26 = vpop.f32.mrb[9].mxu1 }
  0xf3   :  { %v434_v27 = vadd.f32 %v1165_v36, %v433_v25  ;;  %v562_v28 = vadd.f32 %v1165_v36, %v561_v26  ;;  %v909_v29 = vpop.f32.mrb[10].mxu0  ;;  %v941_v30 = vpop.f32.mrb[10].mxu1 }
  0xf4   :  { %v666_v31 = vmax.f32 %v442_v23, 0.0  ;;  %v698_v32 = vmax.f32 %v570_v24, 0.0  ;;  %v445_v33 = vadd.f32 %v909_v29, %v1165_v36  ;;  %v573_v34 = vadd.f32 %v941_v30, %v1165_v36  ;;  %v436_v35 = vpop.f32.mrb[11].mxu0  ;;  %v564_v37 = vpop.f32.mrb[11].mxu1 }
  0xf5   :  { %v664_v38 = vmax.f32 %v434_v27, 0.0  ;;  %v696_v39 = vmax.f32 %v562_v28, 0.0  ;;  %v437_v40 = vadd.f32 %v1165_v36, %v436_v35  ;;  %v565_v41 = vadd.f32 %v1165_v36, %v564_v37 }
  0xf6   :  { %731 = vst.msk [vmem:[%s1490_s3 + $0x50] sm:$0xff] %vm720_vm2, %v666_v31  ;;  %763 = vst.msk [vmem:[%s1490_s3 + $0x150] sm:$0xff] %vm720_vm2, %v698_v32  ;;  %v667_v42 = vmax.f32 %v445_v33, 0.0  ;;  %v699_v43 = vmax.f32 %v573_v34, 0.0 }
  0xf7   :  { %729 = vst.msk [vmem:[%s1490_s3 + $0x40] sm:$0xff] %vm720_vm2, %v664_v38  ;;  %761 = vst.msk [vmem:[%s1490_s3 + $0x140] sm:$0xff] %vm720_vm2, %v696_v39  ;;  %v665_v44 = vmax.f32 %v437_v40, 0.0  ;;  %v697_v45 = vmax.f32 %v565_v41, 0.0 }
  0xf8   :  { %732 = vst.msk [vmem:[%s1490_s3 + $0x58] sm:$0xff] %vm720_vm2, %v667_v42  ;;  %764 = vst.msk [vmem:[%s1490_s3 + $0x158] sm:$0xff] %vm720_vm2, %v699_v43 }
  0xf9   :  { %730 = vst.msk [vmem:[%s1490_s3 + $0x48] sm:$0xff] %vm720_vm2, %v665_v44  ;;  %762 = vst.msk [vmem:[%s1490_s3 + $0x148] sm:$0xff] %vm720_vm2, %v697_v45  ;;  %v912_v46 = vpop.f32.mrb[12].mxu0  ;;  %v944_v47 = vpop.f32.mrb[12].mxu1 }
  0xfa   :  { %v458_v48 = vadd.f32 %v912_v46, %v1165_v36  ;;  %v586_v49 = vadd.f32 %v944_v47, %v1165_v36  ;;  %v449_v50 = vpop.f32.mrb[13].mxu0  ;;  %v577_v51 = vpop.f32.mrb[13].mxu1 }
  0xfb   :  { %v450_v52 = vadd.f32 %v1165_v36, %v449_v50  ;;  %v578_v53 = vadd.f32 %v1165_v36, %v577_v51  ;;  %v913_v54 = vpop.f32.mrb[14].mxu0  ;;  %v945_v55 = vpop.f32.mrb[14].mxu1 }
  0xfc   :  { %v670_v56 = vmax.f32 %v458_v48, 0.0  ;;  %v702_v57 = vmax.f32 %v586_v49, 0.0  ;;  %v461_v58 = vadd.f32 %v913_v54, %v1165_v36  ;;  %v589_v59 = vadd.f32 %v945_v55, %v1165_v36  ;;  %v452_v60 = vpop.f32.mrb[15].mxu0  ;;  %v580_v61 = vpop.f32.mrb[15].mxu1 }
  0xfd   :  { %v668_v62 = vmax.f32 %v450_v52, 0.0  ;;  %v700_v63 = vmax.f32 %v578_v53, 0.0  ;;  %v453_v0 = vadd.f32 %v1165_v36, %v452_v60  ;;  %v581_v1 = vadd.f32 %v1165_v36, %v580_v61 }
  0xfe   :  { %735 = vst.msk [vmem:[%s1490_s3 + $0x70] sm:$0xff] %vm720_vm2, %v670_v56  ;;  %767 = vst.msk [vmem:[%s1490_s3 + $0x170] sm:$0xff] %vm720_vm2, %v702_v57  ;;  %v671_v2 = vmax.f32 %v461_v58, 0.0  ;;  %v703_v3 = vmax.f32 %v589_v59, 0.0 }
  0xff   :  { %733 = vst.msk [vmem:[%s1490_s3 + $0x60] sm:$0xff] %vm720_vm2, %v668_v62  ;;  %765 = vst.msk [vmem:[%s1490_s3 + $0x160] sm:$0xff] %vm720_vm2, %v700_v63  ;;  %v669_v4 = vmax.f32 %v453_v0, 0.0  ;;  %v701_v5 = vmax.f32 %v581_v1, 0.0 }
 0x100   :  { %736 = vst.msk [vmem:[%s1490_s3 + $0x78] sm:$0xff] %vm720_vm2, %v671_v2  ;;  %768 = vst.msk [vmem:[%s1490_s3 + $0x178] sm:$0xff] %vm720_vm2, %v703_v3 }
 0x101   :  { %734 = vst.msk [vmem:[%s1490_s3 + $0x68] sm:$0xff] %vm720_vm2, %v669_v4  ;;  %766 = vst.msk [vmem:[%s1490_s3 + $0x168] sm:$0xff] %vm720_vm2, %v701_v5  ;;  %v916_v6 = vpop.f32.mrb[16].mxu0  ;;  %v948_v7 = vpop.f32.mrb[16].mxu1 }
 0x102   :  { %v474_v8 = vadd.f32 %v916_v6, %v1165_v36  ;;  %v602_v9 = vadd.f32 %v948_v7, %v1165_v36  ;;  %v465_v10 = vpop.f32.mrb[17].mxu0  ;;  %v593_v11 = vpop.f32.mrb[17].mxu1 }
 0x103   :  { %v466_v12 = vadd.f32 %v1165_v36, %v465_v10  ;;  %v594_v13 = vadd.f32 %v1165_v36, %v593_v11  ;;  %v917_v14 = vpop.f32.mrb[18].mxu0  ;;  %v949_v15 = vpop.f32.mrb[18].mxu1 }
 0x104   :  { %v674_v16 = vmax.f32 %v474_v8, 0.0  ;;  %v706_v17 = vmax.f32 %v602_v9, 0.0  ;;  %v477_v18 = vadd.f32 %v917_v14, %v1165_v36  ;;  %v605_v19 = vadd.f32 %v949_v15, %v1165_v36  ;;  %v468_v20 = vpop.f32.mrb[19].mxu0  ;;  %v596_v21 = vpop.f32.mrb[19].mxu1 }
 0x105   :  { %v672_v22 = vmax.f32 %v466_v12, 0.0  ;;  %v704_v23 = vmax.f32 %v594_v13, 0.0  ;;  %v469_v24 = vadd.f32 %v1165_v36, %v468_v20  ;;  %v597_v25 = vadd.f32 %v1165_v36, %v596_v21 }
 0x106   :  { %739 = vst.msk [vmem:[%s1490_s3 + $0x90] sm:$0xff] %vm720_vm2, %v674_v16  ;;  %771 = vst.msk [vmem:[%s1490_s3 + $0x190] sm:$0xff] %vm720_vm2, %v706_v17  ;;  %v675_v26 = vmax.f32 %v477_v18, 0.0  ;;  %v707_v27 = vmax.f32 %v605_v19, 0.0 }
 0x107   :  { %737 = vst.msk [vmem:[%s1490_s3 + $0x80] sm:$0xff] %vm720_vm2, %v672_v22  ;;  %769 = vst.msk [vmem:[%s1490_s3 + $0x180] sm:$0xff] %vm720_vm2, %v704_v23  ;;  %v673_v28 = vmax.f32 %v469_v24, 0.0  ;;  %v705_v29 = vmax.f32 %v597_v25, 0.0 }
 0x108   :  { %740 = vst.msk [vmem:[%s1490_s3 + $0x98] sm:$0xff] %vm720_vm2, %v675_v26  ;;  %772 = vst.msk [vmem:[%s1490_s3 + $0x198] sm:$0xff] %vm720_vm2, %v707_v27 }
 0x109   :  { %738 = vst.msk [vmem:[%s1490_s3 + $0x88] sm:$0xff] %vm720_vm2, %v673_v28  ;;  %770 = vst.msk [vmem:[%s1490_s3 + $0x188] sm:$0xff] %vm720_vm2, %v705_v29  ;;  %v920_v30 = vpop.f32.mrb[20].mxu0  ;;  %v952_v31 = vpop.f32.mrb[20].mxu1 }
 0x10a   :  { %v490_v32 = vadd.f32 %v920_v30, %v1165_v36  ;;  %v618_v33 = vadd.f32 %v952_v31, %v1165_v36  ;;  %v481_v34 = vpop.f32.mrb[21].mxu0  ;;  %v609_v35 = vpop.f32.mrb[21].mxu1 }
 0x10b   :  { %v482_v37 = vadd.f32 %v1165_v36, %v481_v34  ;;  %v610_v38 = vadd.f32 %v1165_v36, %v609_v35  ;;  %v921_v39 = vpop.f32.mrb[22].mxu0  ;;  %v953_v40 = vpop.f32.mrb[22].mxu1 }
 0x10c   :  { %v678_v41 = vmax.f32 %v490_v32, 0.0  ;;  %v710_v42 = vmax.f32 %v618_v33, 0.0  ;;  %v493_v43 = vadd.f32 %v921_v39, %v1165_v36  ;;  %v621_v44 = vadd.f32 %v953_v40, %v1165_v36  ;;  %v484_v45 = vpop.f32.mrb[23].mxu0  ;;  %v612_v46 = vpop.f32.mrb[23].mxu1 }
 0x10d   :  { %v676_v47 = vmax.f32 %v482_v37, 0.0  ;;  %v708_v48 = vmax.f32 %v610_v38, 0.0  ;;  %v485_v49 = vadd.f32 %v1165_v36, %v484_v45  ;;  %v613_v50 = vadd.f32 %v1165_v36, %v612_v46 }
 0x10e   :  { %743 = vst.msk [vmem:[%s1490_s3 + $0xb0] sm:$0xff] %vm720_vm2, %v678_v41  ;;  %775 = vst.msk [vmem:[%s1490_s3 + $0x1b0] sm:$0xff] %vm720_vm2, %v710_v42  ;;  %v679_v51 = vmax.f32 %v493_v43, 0.0  ;;  %v711_v52 = vmax.f32 %v621_v44, 0.0 }
 0x10f   :  { %741 = vst.msk [vmem:[%s1490_s3 + $0xa0] sm:$0xff] %vm720_vm2, %v676_v47  ;;  %773 = vst.msk [vmem:[%s1490_s3 + $0x1a0] sm:$0xff] %vm720_vm2, %v708_v48  ;;  %v677_v53 = vmax.f32 %v485_v49, 0.0  ;;  %v709_v54 = vmax.f32 %v613_v50, 0.0 }
 0x110   :  { %744 = vst.msk [vmem:[%s1490_s3 + $0xb8] sm:$0xff] %vm720_vm2, %v679_v51  ;;  %776 = vst.msk [vmem:[%s1490_s3 + $0x1b8] sm:$0xff] %vm720_vm2, %v711_v52 }
 0x111   :  { %742 = vst.msk [vmem:[%s1490_s3 + $0xa8] sm:$0xff] %vm720_vm2, %v677_v53  ;;  %774 = vst.msk [vmem:[%s1490_s3 + $0x1a8] sm:$0xff] %vm720_vm2, %v709_v54  ;;  %v924_v55 = vpop.f32.mrb[24].mxu0  ;;  %v956_v56 = vpop.f32.mrb[24].mxu1 }
 0x112   :  { %v506_v57 = vadd.f32 %v924_v55, %v1165_v36  ;;  %v634_v58 = vadd.f32 %v956_v56, %v1165_v36  ;;  %v497_v59 = vpop.f32.mrb[25].mxu0  ;;  %v625_v60 = vpop.f32.mrb[25].mxu1 }
 0x113   :  { %v498_v61 = vadd.f32 %v1165_v36, %v497_v59  ;;  %v626_v62 = vadd.f32 %v1165_v36, %v625_v60  ;;  %v925_v63 = vpop.f32.mrb[26].mxu0  ;;  %v957_v0 = vpop.f32.mrb[26].mxu1 }
 0x114   :  { %v682_v1 = vmax.f32 %v506_v57, 0.0  ;;  %v714_v2 = vmax.f32 %v634_v58, 0.0  ;;  %v509_v3 = vadd.f32 %v925_v63, %v1165_v36  ;;  %v637_v4 = vadd.f32 %v957_v0, %v1165_v36  ;;  %v500_v5 = vpop.f32.mrb[27].mxu0  ;;  %v628_v6 = vpop.f32.mrb[27].mxu1 }
 0x115   :  { %v680_v7 = vmax.f32 %v498_v61, 0.0  ;;  %v712_v8 = vmax.f32 %v626_v62, 0.0  ;;  %v501_v9 = vadd.f32 %v1165_v36, %v500_v5  ;;  %v629_v10 = vadd.f32 %v1165_v36, %v628_v6 }
 0x116   :  { %747 = vst.msk [vmem:[%s1490_s3 + $0xd0] sm:$0xff] %vm720_vm2, %v682_v1  ;;  %779 = vst.msk [vmem:[%s1490_s3 + $0x1d0] sm:$0xff] %vm720_vm2, %v714_v2  ;;  %v683_v11 = vmax.f32 %v509_v3, 0.0  ;;  %v715_v12 = vmax.f32 %v637_v4, 0.0 }
 0x117   :  { %745 = vst.msk [vmem:[%s1490_s3 + $0xc0] sm:$0xff] %vm720_vm2, %v680_v7  ;;  %777 = vst.msk [vmem:[%s1490_s3 + $0x1c0] sm:$0xff] %vm720_vm2, %v712_v8  ;;  %v681_v13 = vmax.f32 %v501_v9, 0.0  ;;  %v713_v14 = vmax.f32 %v629_v10, 0.0 }
 0x118   :  { %748 = vst.msk [vmem:[%s1490_s3 + $0xd8] sm:$0xff] %vm720_vm2, %v683_v11  ;;  %780 = vst.msk [vmem:[%s1490_s3 + $0x1d8] sm:$0xff] %vm720_vm2, %v715_v12 }
 0x119   :  { %746 = vst.msk [vmem:[%s1490_s3 + $0xc8] sm:$0xff] %vm720_vm2, %v681_v13  ;;  %778 = vst.msk [vmem:[%s1490_s3 + $0x1c8] sm:$0xff] %vm720_vm2, %v713_v14  ;;  %v928_v15 = vpop.f32.mrb[28].mxu0  ;;  %v960_v16 = vpop.f32.mrb[28].mxu1 }
 0x11a   :  { %v522_v17 = vadd.f32 %v928_v15, %v1165_v36  ;;  %v650_v18 = vadd.f32 %v960_v16, %v1165_v36  ;;  %v513_v19 = vpop.f32.mrb[29].mxu0  ;;  %v641_v20 = vpop.f32.mrb[29].mxu1 }
 0x11b   :  { %v514_v21 = vadd.f32 %v1165_v36, %v513_v19  ;;  %v642_v22 = vadd.f32 %v1165_v36, %v641_v20  ;;  %v929_v23 = vpop.f32.mrb[30].mxu0  ;;  %v961_v24 = vpop.f32.mrb[30].mxu1 }
 0x11c   :  { %v686_v25 = vmax.f32 %v522_v17, 0.0  ;;  %v718_v26 = vmax.f32 %v650_v18, 0.0  ;;  %v525_v27 = vadd.f32 %v929_v23, %v1165_v36  ;;  %v653_v28 = vadd.f32 %v961_v24, %v1165_v36  ;;  %v516_v29 = vpop.f32.mrb[31].mxu0  ;;  %v644_v30 = vpop.f32.mrb[31].mxu1 }
 0x11d   :  { %v684_v31 = vmax.f32 %v514_v21, 0.0  ;;  %v716_v32 = vmax.f32 %v642_v22, 0.0  ;;  %v517_v33 = vadd.f32 %v1165_v36, %v516_v29  ;;  %v645_v34 = vadd.f32 %v1165_v36, %v644_v30 }
 0x11e   :  { %751 = vst.msk [vmem:[%s1490_s3 + $0xf0] sm:$0xff] %vm720_vm2, %v686_v25  ;;  %783 = vst.msk [vmem:[%s1490_s3 + $0x1f0] sm:$0xff] %vm720_vm2, %v718_v26  ;;  %v687_v35 = vmax.f32 %v525_v27, 0.0  ;;  %v719_v37 = vmax.f32 %v653_v28, 0.0 }
 0x11f   :  { %749 = vst.msk [vmem:[%s1490_s3 + $0xe0] sm:$0xff] %vm720_vm2, %v684_v31  ;;  %781 = vst.msk [vmem:[%s1490_s3 + $0x1e0] sm:$0xff] %vm720_vm2, %v716_v32  ;;  %v685_v36 = vmax.f32 %v517_v33, 0.0  ;;  %v717_v38 = vmax.f32 %v645_v34, 0.0 }
 0x120   :  { %752 = vst.msk [vmem:[%s1490_s3 + $0xf8] sm:$0xff] %vm720_vm2, %v687_v35  ;;  %784 = vst.msk [vmem:[%s1490_s3 + $0x1f8] sm:$0xff] %vm720_vm2, %v719_v37 }
 0x121   :  { %750 = vst.msk [vmem:[%s1490_s3 + $0xe8] sm:$0xff] %vm720_vm2, %v685_v36  ;;  %782 = vst.msk [vmem:[%s1490_s3 + $0x1e8] sm:$0xff] %vm720_vm2, %v717_v38 }

</bundles_post_ra>
